<compile_context>
chip_gen: v6e
topology: v6e:2x2x1
jax: 0.10.0
libtpu: 0.0.40
codegen_flags: <defaults>
</compile_context>

<pallas_src>
import jax
import jax.numpy as jnp
from jax.experimental import pallas as pl
from jax.experimental.pallas import tpu as pltpu


def _tsp_context_kernel(i_ref, first_ref, cur_ref, emb_ref, ph_out_ref, wt_ref, out_ref):
    # i_ref:      SMEM (1,)       int32  step counter td['i']
    # first_ref:  VMEM (B, 1)     int32  first node index per batch element
    # cur_ref:    VMEM (B, 1)     int32  current node index per batch element
    # emb_ref:    VMEM (B*N, D)   f32    node embeddings, flattened batch-major
    # ph_out_ref: VMEM (1, D)     f32    precomputed W_placeholder @ W_proj.T
    # wt_ref:     VMEM (2, D, D)  f32    W_proj.T split: [0] = rows :D, [1] = rows D:
    # out_ref:    VMEM (B, D)     f32
    B = first_ref.shape[0]
    BN, D = emb_ref.shape
    N = BN // B

    @pl.when(i_ref[0] < 1)
    def _():
        # Step 0: every row's context is W_placeholder, so the projection is a
        # single precomputed (D,) vector -> just broadcast-store it.
        out_ref[...] = jnp.broadcast_to(ph_out_ref[...], (B, D)).astype(out_ref.dtype)

    @pl.when(i_ref[0] >= 1)
    def _():
        emb = emb_ref[...]                                              # (B*N, D)

        # Flat row targets into the (B*N, D) table: rows [0, B) pick the first
        # node of each batch element, rows [B, 2B) pick the current node.
        b_iota = jax.lax.broadcasted_iota(jnp.int32, (B, 1), 0)        # (B, 1)
        tgt_first = b_iota * N + first_ref[...]                        # (B, 1)
        tgt_cur = b_iota * N + cur_ref[...]                            # (B, 1)
        tgt = jnp.concatenate([tgt_first, tgt_cur], axis=0)            # (2B, 1)

        # Single (2B, B*N) one-hot -> ONE MXU matmul performs both gathers.
        col = jax.lax.broadcasted_iota(jnp.int32, (2 * B, BN), 1)      # (2B, B*N)
        onehot = (col == tgt).astype(emb.dtype)                        # (2B, B*N)
        sel = jnp.dot(onehot, emb, preferred_element_type=jnp.float32)  # (2B, D)

        g_first = sel[:B, :]                                           # (B, D)
        g_cur = sel[B:, :]                                             # (B, D)

        # project_context (Linear(2D -> D, no bias)) without materializing the
        # (B, 2D) concat: out = g_first @ Wt[:D, :] + g_cur @ Wt[D:, :].
        # (Kept in f32 for exact parity with the f32 reference; on v6e/v7x the
        #  operands could be cast to bf16 with f32 accumulation for extra speed.)
        out = jnp.dot(g_first, wt_ref[0], preferred_element_type=jnp.float32)
        out = out + jnp.dot(g_cur, wt_ref[1], preferred_element_type=jnp.float32)
        out_ref[...] = out.astype(out_ref.dtype)


def prepare_tsp_context_params(W_placeholder, W_proj):
    """One-time (init-time) parameter prep.

    Pre-transposes / splits W_proj and precomputes the step-0 placeholder
    projection so the per-decode-step forward pays no extra transpose HLO.
    W_placeholder: (2D,) f32; W_proj: (D, 2D) f32 (PyTorch Linear weight layout).
    Returns (w_t (2, D, D), ph_out (1, D)).
    """
    D, two_d = W_proj.shape
    assert two_d == 2 * D
    w_proj = jnp.asarray(W_proj, jnp.float32)
    w_ph = jnp.asarray(W_placeholder, jnp.float32)
    w_t = w_proj.T.reshape(2, D, D)            # [W_proj.T rows :D, rows D:]
    ph_out = (w_ph @ w_proj.T).reshape(1, D)   # projection of the placeholder context
    return w_t, ph_out


def tsp_context_forward(embeddings, first_node, current_node, i, w_t, ph_out):
    """embeddings: (B, N, D) f32; first_node/current_node: (B,) int; i: scalar int.

    w_t, ph_out come from prepare_tsp_context_params. Returns (B, D) f32.
    """
    B, N, D = embeddings.shape
    i_arr = jnp.asarray(i, jnp.int32).reshape(1)
    first = jnp.asarray(first_node, jnp.int32).reshape(B, 1)
    cur = jnp.asarray(current_node, jnp.int32).reshape(B, 1)
    emb_flat = embeddings.reshape(B * N, D)  # major-dim collapse -> no copy

    # TODO(synk): for large B*N*D (full-table VMEM residency > ~64 MiB on v7x)
    # switch embeddings to memory_space=pl.ANY + scalar-prefetched indices and
    # DMA only the two needed rows per batch element instead of the full table.
    return pl.pallas_call(
        _tsp_context_kernel,
        out_shape=jax.ShapeDtypeStruct((B, D), embeddings.dtype),
        in_specs=[
            pl.BlockSpec(memory_space=pltpu.MemorySpace.SMEM),   # i
            pl.BlockSpec(memory_space=pltpu.MemorySpace.VMEM),   # first_node
            pl.BlockSpec(memory_space=pltpu.MemorySpace.VMEM),   # current_node
            pl.BlockSpec(memory_space=pltpu.MemorySpace.VMEM),   # embeddings (B*N, D)
            pl.BlockSpec(memory_space=pltpu.MemorySpace.VMEM),   # placeholder projection
            pl.BlockSpec(memory_space=pltpu.MemorySpace.VMEM),   # W_proj^T as (2, D, D)
        ],
        out_specs=pl.BlockSpec(memory_space=pltpu.MemorySpace.VMEM),
    )(i_arr, first, cur, emb_flat, ph_out, w_t)


def tsp_context_reference(embeddings, first_node, current_node, i, W_placeholder, W_proj):
    """Pure-JAX reference mirroring the PyTorch forward."""
    B, N, D = embeddings.shape
    if int(i) < 1:
        ctx = jnp.broadcast_to(W_placeholder[None, :], (B, 2 * D))
    else:
        b_idx = jnp.arange(B)
        g_first = embeddings[b_idx, first_node]
        g_cur = embeddings[b_idx, current_node]
        ctx = jnp.concatenate([g_first, g_cur], axis=-1)
    return ctx @ W_proj.T


if __name__ == "__main__":
    # TODO(synk): multi-start variant (first_node.dim() > 1) is not implemented;
    # this covers the standard (B,) index case.
    B, N, D = 8, 16, 128  # batch, num TSP nodes, embedding_dim

    key = jax.random.PRNGKey(0)
    k_emb, k_ph, k_w, k_f, k_c = jax.random.split(key, 5)

    embeddings = jax.random.normal(k_emb, (B, N, D), dtype=jnp.float32)
    # nn.Parameter(torch.Tensor(2D).uniform_(-1, 1))
    W_placeholder = jax.random.uniform(k_ph, (2 * D,), jnp.float32, -1.0, 1.0)
    # nn.Linear(2D, D, bias=False) weight (D, 2D), Kaiming-uniform-ish scale.
    bound = 1.0 / jnp.sqrt(2.0 * D)
    W_proj = jax.random.uniform(k_w, (D, 2 * D), jnp.float32, -bound, bound)

    first_node = jax.random.randint(k_f, (B,), 0, N, dtype=jnp.int32)
    current_node = jax.random.randint(k_c, (B,), 0, N, dtype=jnp.int32)

    # One-time parameter prep (init time, not per decode step).
    w_t, ph_out = prepare_tsp_context_params(W_placeholder, W_proj)
    w_t, ph_out = jax.block_until_ready((w_t, ph_out))

    ok = True
    for step_i in (0, 3):  # placeholder branch and gather branch
        out = tsp_context_forward(embeddings, first_node, current_node, step_i,
                                  w_t, ph_out)
        out = jax.block_until_ready(out)
        ref = tsp_context_reference(embeddings, first_node, current_node, step_i,
                                    W_placeholder, W_proj)
        ok = ok and bool(jnp.allclose(out, ref, atol=1e-4, rtol=1e-4))

    if ok:
        print("KERNEL_OK")
    else:
        raise SystemExit("mismatch vs reference")
</pallas_src>

<mosaic_0001>
module attributes {stable_mosaic.version = 11 : i64} {
  func.func @_tsp_context_kernel(%arg0: memref<1xi32, #tpu.memory_space<smem>>, %arg1: memref<8x1xi32, #tpu.memory_space<vmem>>, %arg2: memref<8x1xi32, #tpu.memory_space<vmem>>, %arg3: memref<128x128xf32, #tpu.memory_space<vmem>>, %arg4: memref<1x128xf32, #tpu.memory_space<vmem>>, %arg5: memref<2x128x128xf32, #tpu.memory_space<vmem>>, %arg6: memref<8x128xf32, #tpu.memory_space<vmem>>) attributes {dimension_semantics = [], scalar_prefetch = 0 : i64, scratch_operands = 0 : i64, tpu.core_type = #tpu.core_type<tc>} {
    %c0 = arith.constant 0 : index
    %0 = memref.load %arg0[%c0] : memref<1xi32, #tpu.memory_space<smem>>
    %c1_i32 = arith.constant 1 : i32
    %1 = arith.cmpi slt, %0, %c1_i32 : i32
    %2 = arith.extui %1 : i1 to i32
    %c0_i32 = arith.constant 0 : i32
    %3 = arith.cmpi ne, %2, %c0_i32 : i32
    scf.if %3 {
      %c0_3 = arith.constant 0 : index
      %c0_4 = arith.constant 0 : index
      %8 = vector.load %arg4[%c0_3, %c0_4] : memref<1x128xf32, #tpu.memory_space<vmem>>, vector<1x128xf32>
      %9 = vector.shape_cast %8 : vector<1x128xf32> to vector<1x128xf32>
      %10 = vector.broadcast %9 : vector<1x128xf32> to vector<8x128xf32>
      %c0_5 = arith.constant 0 : index
      %c0_6 = arith.constant 0 : index
      %11 = vector.load %arg6[%c0_5, %c0_6] : memref<8x128xf32, #tpu.memory_space<vmem>>, vector<8x128xf32>
      tpu.vector_store %arg6[%c0_5, %c0_6], %10 {strides = array<i32>} : memref<8x128xf32, #tpu.memory_space<vmem>>, vector<8x128xf32>,
    } else {
    }
    %c0_0 = arith.constant 0 : index
    %4 = memref.load %arg0[%c0_0] : memref<1xi32, #tpu.memory_space<smem>>
    %c1_i32_1 = arith.constant 1 : i32
    %5 = arith.cmpi sge, %4, %c1_i32_1 : i32
    %6 = arith.extui %5 : i1 to i32
    %c0_i32_2 = arith.constant 0 : i32
    %7 = arith.cmpi ne, %6, %c0_i32_2 : i32
    scf.if %7 {
      %c0_3 = arith.constant 0 : index
      %c0_4 = arith.constant 0 : index
      %8 = vector.load %arg3[%c0_3, %c0_4] : memref<128x128xf32, #tpu.memory_space<vmem>>, vector<128x128xf32>
      %9 = tpu.iota {dimensions = array<i32: 0>} : vector<8x1xi32>
      %c16_i32 = arith.constant 16 : i32
      %10 = vector.broadcast %c16_i32 : i32 to vector<8x1xi32>
      %11 = arith.muli %9, %10 : vector<8x1xi32>
      %c0_5 = arith.constant 0 : index
      %c0_6 = arith.constant 0 : index
      %12 = vector.load %arg1[%c0_5, %c0_6] : memref<8x1xi32, #tpu.memory_space<vmem>>, vector<8x1xi32>
      %13 = arith.addi %11, %12 : vector<8x1xi32>
      %c16_i32_7 = arith.constant 16 : i32
      %14 = vector.broadcast %c16_i32_7 : i32 to vector<8x1xi32>
      %15 = arith.muli %9, %14 : vector<8x1xi32>
      %c0_8 = arith.constant 0 : index
      %c0_9 = arith.constant 0 : index
      %16 = vector.load %arg2[%c0_8, %c0_9] : memref<8x1xi32, #tpu.memory_space<vmem>>, vector<8x1xi32>
      %17 = arith.addi %15, %16 : vector<8x1xi32>
      %18 = tpu.concatenate %13, %17 in 0 : vector<8x1xi32>, vector<8x1xi32> -> vector<16x1xi32>
      %19 = tpu.iota {dimensions = array<i32: 1>} : vector<16x128xi32>
      %20 = vector.broadcast %18 : vector<16x1xi32> to vector<16x128xi32>
      %21 = arith.cmpi eq, %19, %20 : vector<16x128xi32>
      %22 = arith.extui %21 : vector<16x128xi1> to vector<16x128xi32>
      %23 = arith.sitofp %22 : vector<16x128xi32> to vector<16x128xf32>
      %cst = arith.constant dense<0.000000e+00> : vector<16x128xf32>
      %24 = tpu.matmul %23, %8, %cst {dimension_numbers = #tpu.dot_dimension_numbers<[1], [0], [0], [1], [0, 0, 1, 1], [], []>} : vector<16x128xf32>, vector<128x128xf32>, vector<16x128xf32> -> vector<16x128xf32>
      %25 = vector.extract_strided_slice %24 {offsets = [0, 0], sizes = [8, 128], strides = [1, 1]} : vector<16x128xf32> to vector<8x128xf32>
      %26 = vector.extract_strided_slice %24 {offsets = [8, 0], sizes = [8, 128], strides = [1, 1]} : vector<16x128xf32> to vector<8x128xf32>
      %c0_10 = arith.constant 0 : index
      %c0_11 = arith.constant 0 : index
      %c0_12 = arith.constant 0 : index
      %27 = vector.load %arg5[%c0_10, %c0_11, %c0_12] : memref<2x128x128xf32, #tpu.memory_space<vmem>>, vector<1x128x128xf32>
      %28 = vector.shape_cast %27 : vector<1x128x128xf32> to vector<128x128xf32>
      %cst_13 = arith.constant dense<0.000000e+00> : vector<8x128xf32>
      %29 = tpu.matmul %25, %28, %cst_13 {dimension_numbers = #tpu.dot_dimension_numbers<[1], [0], [0], [1], [0, 0, 1, 1], [], []>} : vector<8x128xf32>, vector<128x128xf32>, vector<8x128xf32> -> vector<8x128xf32>
      %c1 = arith.constant 1 : index
      %c0_14 = arith.constant 0 : index
      %c0_15 = arith.constant 0 : index
      %30 = vector.load %arg5[%c1, %c0_14, %c0_15] : memref<2x128x128xf32, #tpu.memory_space<vmem>>, vector<1x128x128xf32>
      %31 = vector.shape_cast %30 : vector<1x128x128xf32> to vector<128x128xf32>
      %cst_16 = arith.constant dense<0.000000e+00> : vector<8x128xf32>
      %32 = tpu.matmul %26, %31, %cst_16 {dimension_numbers = #tpu.dot_dimension_numbers<[1], [0], [0], [1], [0, 0, 1, 1], [], []>} : vector<8x128xf32>, vector<128x128xf32>, vector<8x128xf32> -> vector<8x128xf32>
      %33 = arith.addf %29, %32 : vector<8x128xf32>
      %c0_17 = arith.constant 0 : index
      %c0_18 = arith.constant 0 : index
      %34 = vector.load %arg6[%c0_17, %c0_18] : memref<8x128xf32, #tpu.memory_space<vmem>>, vector<8x128xf32>
      tpu.vector_store %arg6[%c0_17, %c0_18], %33 {strides = array<i32>} : memref<8x128xf32, #tpu.memory_space<vmem>>, vector<8x128xf32>,
    } else {
    }
    return
  }
}

</mosaic_0001>

<bundles_post_ra>
// kernel: tpu_custom_call.1
= control target key start
LH: loop header
LB: loop body
LE: loop exit
PB: predicated region body
PF: predicated region fallthrough
CT: control target
= control target key end

     0   :  { %s714_s0 = inlined_call_operand.<no memory space> [shape: s32[1], index: 0, kind: input, shape index: {}]   ;;  %s715_s1 = inlined_call_operand.vmem [shape: s32[8,1], index: 1, kind: input, shape index: {}]   ;;  %s716_s2 = inlined_call_operand.vmem [shape: s32[8,1], index: 2, kind: input, shape index: {}]   ;;  %s717_s3 = inlined_call_operand.hbm [shape: f32[128,128], index: 3, kind: input, shape index: {}]   ;;  %s718_s4 = inlined_call_operand.vmem [shape: f32[1,128], index: 4, kind: input, shape index: {}]   ;;  %s719_s5 = inlined_call_operand.hbm [shape: f32[2,128,128], index: 5, kind: input, shape index: {}]   ;;  %s720_s6 = inlined_call_operand.hbm [shape: f32[8,128], index: 6, kind: output, shape index: {}]  }
   0x1   :  { %11 = sst [smem:[#allocation2]] %s714_s0 }
   0x2   :  { %12 = vsyncpa [#allocation4], 0 }
   0x3   :  { %13 = vsyncpa [#allocation7], 0 }
   0x4   :  { %14 = vsyncpa [#allocation5], 0  ;;  %s613_s23 = smov [#allocation3]  }
   0x5   :  { %s26_s24 = sshll.u32 %s613_s23, 4  ;;  %s27_s24 = int_to_ptr.vmem [resolvable:$true] %s26_s24 }
   0x6   :  { %s555_s25 = scalar_lea.vmem %s27_s24, 2048  ;;  %p560_p1 = scmp.lt.s32.totalorder %s27_s24, %s27_s24 }
   0x7   :  { %p556_p0 = scmp.ne.s32.totalorder %s27_s24, %s555_s25  ;;  %p561_p2 = scmp.lt.s32.totalorder %s555_s25, %s555_s25 }
   0x9   :  { %p562_p3 = por %p561_p2, %p560_p1 }
   0xb   :  { %p563_p4 = pnand %p562_p3, %p556_p0 }
   0xd   :  { %566 = shalt.err (!%p563_p4)
}
   0xe   :  { %s614_s26 = smov 128   ;;  %s615_s27 = smov 8  }
   0xf   :  { %32 = dma.hbm_to_vmem [thread:$0]  %s717_s3, 2048, %s27_s24, [#allocation4], %s614_s26, %s614_s26, %s615_s27  }
  0x10   :  { %s616_s0 = smov [#allocation6]  }
  0x11   :  { %s40_s30 = sshll.u32 %s616_s0, 4  ;;  %s41_s30 = int_to_ptr.vmem [resolvable:$true] %s40_s30 }
  0x12   :  { %s575_s7 = scalar_lea.vmem %s41_s30, 4096  ;;  %p580_p6 = scmp.lt.s32.totalorder %s41_s30, %s41_s30 }
  0x13   :  { %p576_p5 = scmp.ne.s32.totalorder %s41_s30, %s575_s7  ;;  %p581_p7 = scmp.lt.s32.totalorder %s575_s7, %s575_s7 }
  0x15   :  { %p582_p8 = por %p581_p7, %p580_p6 }
  0x17   :  { %p583_p9 = pnand %p582_p8, %p576_p5 }
  0x19   :  { %586 = shalt.err (!%p583_p9)
}
  0x1a   :  { %46 = dma.hbm_to_vmem [thread:$0]  %s719_s5, 4096, %s41_s30, [#allocation7], %s614_s26, %s614_s26, %s615_s27  }
  0x1b   :  { %607 = dma.done.wait [#allocation4], 2048  }
  0x1c   :  { %608 = vsyncadd [#allocation4], 4294965248 }
  0x1d   :  { %609 = dma.done.wait [#allocation7], 4096  }
  0x1e   :  { %610 = vsyncadd [#allocation7], 4294963200  ;;  %s53_s10 = sld [smem:[#allocation2]] }
  0x24   :  { %p373_p10 = scmp.ge.s32.totalorder %s53_s10, 1 }
  0x26   :  { %57 = sbr.rel (%p373_p10) target bundleno = 45 (0x2d), region = 37 }
  0x2b   :  { %v374_v0 = vld [vmem:[%s718_s4] ss:$0 sm:$0xff] }
  0x2c   :  { %65 = vst [vmem:[#allocation8] sm:$0xff] %v374_v0 }
  0x2d PF:  { %s66_s12 = sld [smem:[#allocation2]] }
  0x33   :  { %p375_p11 = scmp.lt.s32.totalorder %s66_s12, 1 }
  0x35   :  { %70 = sbr.rel (%p375_p11) target bundleno = 586 (0x24a), region = 41 }
  0x3a   :  { %v87_v1 = vlaneseq  ;;  %v86_v2 = vld [vmem:[#allocation3 + $0x78] sm:$0xff]  ;;  %v617_v3 = vmov 0   ;;  %v85_v4 = vld [vmem:[#allocation3 + $0x70] sm:$0xff]  ;;  %v84_v6 = vld [vmem:[#allocation3 + $0x68] sm:$0xff]  ;;  %v618_v17 = vmov 0.0   ;;  %v619_v43 = vmov 1.0  }
  0x3b   :  { %546 = vset.pattern.permute.xlu0 %v617_v3  ;;  %432 = vmatprep.subr.mxu0 %v86_v2  ;;  %v90_v7 = vld [vmem:[%s715_s1] sm:$0xff]  ;;  %v82_v12 = vld [vmem:[#allocation3 + $0x58] sm:$0xff]  ;;  %v81_v14 = vld [vmem:[#allocation3 + $0x50] sm:$0xff]  ;;  %vm620_vm2 = vmmov 0  }
  0x3c   :  { %v88_v5 = vshrl.u32 %v87_v1, 7  ;;  %433 = vmatpush3.msra.mxu0 %v86_v2  ;;  %v83_v9 = vld [vmem:[#allocation3 + $0x60] sm:$0xff]  ;;  %v215_v15 = vld [vmem:[#allocation6 + $0xf8] sm:$0xff]  ;;  %v80_v16 = vld [vmem:[#allocation3 + $0x48] sm:$0xff]  ;;  %467 = vmatprep.subr.mxu1 %v618_v17  ;;  %v95_v41 = vand.u32 127, %v87_v1 }
  0x3d   :  { %434 = vmatprep.subr.mxu0 %v85_v4  ;;  %v92_v10 = vld [vmem:[%s716_s2] sm:$0xff]  ;;  %468 = vmatpush3.msra.mxu1 %v215_v15  ;;  %v214_v18 = vld [vmem:[#allocation6 + $0xf0] sm:$0xff]  ;;  %v213_v20 = vld [vmem:[#allocation6 + $0xe8] sm:$0xff] }
  0x3e   :  { %v89_v8 = vmul.u32 16, %v88_v5  ;;  %435 = vmatpush3.msra.mxu0 %v85_v4  ;;  %v79_v19 = vld [vmem:[#allocation3 + $0x40] sm:$0xff]  ;;  %469 = vmatprep.subr.mxu1 %v618_v17  ;;  %v78_v21 = vld [vmem:[#allocation3 + $0x38] sm:$0xff]  ;;  %v77_v23 = vld [vmem:[#allocation3 + $0x30] sm:$0xff] }
  0x3f   :  { %436 = vmatprep.subr.mxu0 %v84_v6  ;;  %470 = vmatpush3.msra.mxu1 %v214_v18  ;;  %v212_v22 = vld [vmem:[#allocation6 + $0xe0] sm:$0xff]  ;;  %v211_v24 = vld [vmem:[#allocation6 + $0xd8] sm:$0xff]  ;;  %v76_v25 = vld [vmem:[#allocation3 + $0x28] sm:$0xff] }
  0x40   :  { %v91_v11 = vadd.s32 %v90_v7, %v89_v8  ;;  %437 = vmatpush3.msra.mxu0 %v84_v6  ;;  %v93_v13 = vadd.s32 %v92_v10, %v89_v8  ;;  %471 = vmatprep.subr.mxu1 %v618_v17  ;;  %v210_v26 = vld [vmem:[#allocation6 + $0xd0] sm:$0xff]  ;;  %v75_v27 = vld [vmem:[#allocation3 + $0x20] sm:$0xff]  ;;  %v209_v28 = vld [vmem:[#allocation6 + $0xc8] sm:$0xff] }
  0x41   :  { %438 = vmatprep.subr.mxu0 %v83_v9  ;;  %472 = vmatpush3.msra.mxu1 %v213_v20  ;;  %v74_v29 = vld [vmem:[#allocation3 + $0x18] sm:$0xff]  ;;  %v208_v30 = vld [vmem:[#allocation6 + $0xc0] sm:$0xff]  ;;  %v73_v31 = vld [vmem:[#allocation3 + $0x10] sm:$0xff] }
  0x42   :  { %97 = vperm.xlu0 %546, %v91_v11   ;;  %439 = vmatpush3.msra.mxu0 %v83_v9  ;;  %v207_v32 = vld [vmem:[#allocation6 + $0xb8] sm:$0xff]  ;;  %v72_v33 = vld [vmem:[#allocation3 + $0x8] sm:$0xff]  ;;  %v206_v34 = vld [vmem:[#allocation6 + $0xb0] sm:$0xff] }
  0x43   :  { %440 = vmatprep.subr.mxu0 %v82_v12  ;;  %473 = vmatprep.subr.mxu1 %v618_v17  ;;  %v71_v35 = vld [vmem:[#allocation3] sm:$0xff]  ;;  %v205_v36 = vld [vmem:[#allocation6 + $0xa8] sm:$0xff]  ;;  %v203_v38 = vld [vmem:[#allocation6 + $0x98] sm:$0xff] }
  0x44   :  { %441 = vmatpush3.msra.mxu0 %v82_v12  ;;  %474 = vmatpush3.msra.mxu1 %v212_v22  ;;  %v204_v37 = vld [vmem:[#allocation6 + $0xa0] sm:$0xff]  ;;  %v202_v39 = vld [vmem:[#allocation6 + $0x90] sm:$0xff]  ;;  %v201_v40 = vld [vmem:[#allocation6 + $0x88] sm:$0xff] }
  0x45   :  { %442 = vmatprep.subr.mxu0 %v81_v14  ;;  %475 = vmatprep.subr.mxu1 %v618_v17  ;;  %v198_v45 = vld [vmem:[#allocation6 + $0x78] sm:$0xff]  ;;  %v197_v46 = vld [vmem:[#allocation6 + $0x70] sm:$0xff]  ;;  %v196_v47 = vld [vmem:[#allocation6 + $0x68] sm:$0xff] }
  0x46   :  { %100 = vperm.xlu0 %546, %v93_v13   ;;  %443 = vmatpush3.msra.mxu0 %v81_v14  ;;  %v195_v48 = vld [vmem:[#allocation6 + $0x60] sm:$0xff]  ;;  %v194_v49 = vld [vmem:[#allocation6 + $0x58] sm:$0xff]  ;;  %v193_v50 = vld [vmem:[#allocation6 + $0x50] sm:$0xff] }
  0x47   :  { %444 = vmatprep.subr.mxu0 %v80_v16  ;;  %476 = vmatpush3.msra.mxu1 %v211_v24  ;;  %v192_v51 = vld [vmem:[#allocation6 + $0x48] sm:$0xff]  ;;  %v191_v52 = vld [vmem:[#allocation6 + $0x40] sm:$0xff]  ;;  %v190_v53 = vld [vmem:[#allocation6 + $0x38] sm:$0xff] }
  0x48   :  { %445 = vmatpush3.msra.mxu0 %v80_v16  ;;  %477 = vmatprep.subr.mxu1 %v618_v17  ;;  %v189_v54 = vld [vmem:[#allocation6 + $0x30] sm:$0xff]  ;;  %v188_v55 = vld [vmem:[#allocation6 + $0x28] sm:$0xff]  ;;  %v187_v56 = vld [vmem:[#allocation6 + $0x20] sm:$0xff] }
  0x49   :  { %446 = vmatprep.subr.mxu0 %v79_v19  ;;  %478 = vmatpush3.msra.mxu1 %v210_v26  ;;  %v186_v57 = vld [vmem:[#allocation6 + $0x18] sm:$0xff]  ;;  %v185_v58 = vld [vmem:[#allocation6 + $0x10] sm:$0xff]  ;;  %v200_v59 = vld [vmem:[#allocation6 + $0x80] sm:$0xff] }
  0x4a   :  { %447 = vmatpush3.msra.mxu0 %v79_v19  ;;  %479 = vmatprep.subr.mxu1 %v618_v17  ;;  %v184_v60 = vld [vmem:[#allocation6 + $0x8] sm:$0xff]  ;;  %v183_v61 = vld [vmem:[#allocation6] sm:$0xff] }
  0x4b   :  { %448 = vmatprep.subr.mxu0 %v78_v21  ;;  %480 = vmatpush3.msra.mxu1 %v209_v28 }
  0x4c   :  { %449 = vmatpush3.msra.mxu0 %v78_v21  ;;  %481 = vmatprep.subr.mxu1 %v618_v17 }
  0x4d   :  { %450 = vmatprep.subr.mxu0 %v77_v23  ;;  %482 = vmatpush3.msra.mxu1 %v208_v30 }
  0x4e   :  { %451 = vmatpush3.msra.mxu0 %v77_v23  ;;  %483 = vmatprep.subr.mxu1 %v618_v17 }
  0x4f   :  { %452 = vmatprep.subr.mxu0 %v76_v25  ;;  %484 = vmatpush3.msra.mxu1 %v207_v32 }
  0x50   :  { %453 = vmatpush3.msra.mxu0 %v76_v25  ;;  %485 = vmatprep.subr.mxu1 %v618_v17 }
  0x51   :  { %454 = vmatprep.subr.mxu0 %v75_v27  ;;  %486 = vmatpush3.msra.mxu1 %v206_v34 }
  0x52   :  { %455 = vmatpush3.msra.mxu0 %v75_v27  ;;  %487 = vmatprep.subr.mxu1 %v618_v17 }
  0x53   :  { %456 = vmatprep.subr.mxu0 %v74_v29  ;;  %488 = vmatpush3.msra.mxu1 %v205_v36 }
  0x54   :  { %457 = vmatpush3.msra.mxu0 %v74_v29  ;;  %489 = vmatprep.subr.mxu1 %v618_v17 }
  0x55   :  { %458 = vmatprep.subr.mxu0 %v73_v31  ;;  %490 = vmatpush3.msra.mxu1 %v204_v37 }
  0x56   :  { %459 = vmatpush3.msra.mxu0 %v73_v31  ;;  %491 = vmatprep.subr.mxu1 %v618_v17 }
  0x57   :  { %460 = vmatprep.subr.mxu0 %v72_v33  ;;  %492 = vmatpush3.msra.mxu1 %v203_v38 }
  0x58   :  { %461 = vmatpush3.msra.mxu0 %v72_v33  ;;  %493 = vmatprep.subr.mxu1 %v618_v17 }
  0x59   :  { %462 = vmatprep.subr.mxu0 %v71_v35  ;;  %494 = vmatpush3.msra.mxu1 %v202_v39 }
  0x5a   :  { %463 = vmatpush3.msra.mxu0 %v71_v35  ;;  %495 = vmatprep.subr.mxu1 %v618_v17 }
  0x5b   :  { %502 = vmatprep.subr.mxu0 %v618_v17  ;;  %496 = vmatpush3.msra.mxu1 %v201_v40 }
  0x5c   :  { %497 = vmatprep.subr.mxu1 %v618_v17  ;;  %499 = vmatprep.mubr.msk.f32.mxu1 %vm620_vm2, %v618_v17 }
  0x5d   :  { %498 = vmatpush3.msra.mxu1 %v200_v59 }
  0xbd   :  { %v98_v42 = vpop.permute.xlu0 %97 }
  0xbe   :  { %vm102_vm0 = vcmp.eq.s32.totalorder %v95_v41, %v98_v42 }
  0xbf   :  { %464 = vmatprep.mubr.msk.f32.mxu0 %vm102_vm0, %v619_v43 }
  0xc1   :  { %v101_v44 = vpop.permute.xlu0 %100 }
  0xc2   :  { %vm103_vm1 = vcmp.eq.s32.totalorder %v95_v41, %v101_v44 }
  0xc3   :  { %465 = vmatmul.mubr.msk.f32.vlgmr.msra.gmra.mxu0 %vm103_vm1, %v619_v43 }
  0xc4   :  { %503 = vmatpush3.msra.mxu0 %v198_v45  ;;  %534 = vmatprep.mubr.msk.f32.mxu0 %vm620_vm2, %v618_v17 }
  0xc5   :  { %504 = vmatprep.subr.mxu0 %v618_v17 }
  0xc6   :  { %505 = vmatpush3.msra.mxu0 %v197_v46 }
  0xc7   :  { %506 = vmatprep.subr.mxu0 %v618_v17 }
  0xc8   :  { %507 = vmatpush3.msra.mxu0 %v196_v47 }
  0xc9   :  { %508 = vmatprep.subr.mxu0 %v618_v17 }
  0xca   :  { %509 = vmatpush3.msra.mxu0 %v195_v48 }
  0xcb   :  { %510 = vmatprep.subr.mxu0 %v618_v17 }
  0xcc   :  { %511 = vmatpush3.msra.mxu0 %v194_v49 }
  0xcd   :  { %512 = vmatprep.subr.mxu0 %v618_v17 }
  0xce   :  { %513 = vmatpush3.msra.mxu0 %v193_v50 }
  0xcf   :  { %514 = vmatprep.subr.mxu0 %v618_v17 }
  0xd0   :  { %515 = vmatpush3.msra.mxu0 %v192_v51 }
  0xd1   :  { %516 = vmatprep.subr.mxu0 %v618_v17 }
  0xd2   :  { %517 = vmatpush3.msra.mxu0 %v191_v52 }
  0xd3   :  { %518 = vmatprep.subr.mxu0 %v618_v17 }
  0xd4   :  { %519 = vmatpush3.msra.mxu0 %v190_v53 }
  0xd5   :  { %520 = vmatprep.subr.mxu0 %v618_v17 }
  0xd6   :  { %521 = vmatpush3.msra.mxu0 %v189_v54 }
  0xd7   :  { %522 = vmatprep.subr.mxu0 %v618_v17 }
  0xd8   :  { %523 = vmatpush3.msra.mxu0 %v188_v55 }
  0xd9   :  { %524 = vmatprep.subr.mxu0 %v618_v17 }
  0xda   :  { %525 = vmatpush3.msra.mxu0 %v187_v56 }
  0xdb   :  { %526 = vmatprep.subr.mxu0 %v618_v17 }
  0xdc   :  { %527 = vmatpush3.msra.mxu0 %v186_v57 }
  0xdd   :  { %528 = vmatprep.subr.mxu0 %v618_v17 }
  0xde   :  { %529 = vmatpush3.msra.mxu0 %v185_v58 }
  0xdf   :  { %530 = vmatprep.subr.mxu0 %v618_v17 }
  0xe0   :  { %531 = vmatpush3.msra.mxu0 %v184_v60 }
  0xe1   :  { %532 = vmatprep.subr.mxu0 %v618_v17 }
  0xe2   :  { %533 = vmatpush3.msra.mxu0 %v183_v61 }
 0x183   :  { %v466_v62 = vpop.f32.mrf.mxu0 }
 0x184   :  { %500 = vmatmul.mubr.f32.vlgmr.msra.gmra.mxu1 %v466_v62 }
 0x185   :  { %v174_v63 = vpop.f32.mrf.mxu0 }
 0x186   :  { %535 = vmatmul.mubr.f32.vlgmr.msra.gmra.mxu0 %v174_v63 }
 0x244   :  { %v282_v0 = vpop.f32.mrf.mxu1 }
 0x246   :  { %v501_v1 = vpop.f32.mrf.mxu1  ;;  %v352_v2 = vpop.f32.mrf.mxu0 }
 0x247   :  { %v353_v3 = vadd.f32 %v352_v2, %v282_v0 }
 0x248   :  { %v536_v4 = vpop.f32.mrf.mxu0 }
 0x249   :  { %356 = vst [vmem:[#allocation8] sm:$0xff] %v353_v3 }
 0x24a PF:  { %s621_s1 = smov [#allocation8]  }
 0x24b   :  { %s363_s2 = sshll.u32 %s621_s1, 4  ;;  %s364_s2 = int_to_ptr.vmem [resolvable:$true] %s363_s2 }
 0x24c   :  { %s587_s15 = scalar_lea.vmem %s364_s2, 128  ;;  %p592_p13 = scmp.lt.s32.totalorder %s364_s2, %s364_s2 }
 0x24d   :  { %p588_p12 = scmp.ne.s32.totalorder %s364_s2, %s587_s15  ;;  %p593_p0 = scmp.lt.s32.totalorder %s587_s15, %s587_s15 }
 0x24f   :  { %p594_p1 = por %p593_p0, %p592_p13 }
 0x251   :  { %p595_p2 = pnand %p594_p1, %p588_p12 }
 0x253   :  { %598 = shalt.err (!%p595_p2)
}
 0x254   :  { %366 = dma.vmem_to_hbm [thread:$0]  %s364_s2, 128, %s720_s6, [#allocation5]  }
 0x255   :  { %611 = dma.done.wait [#allocation5], 128  }
 0x256   :  { %612 = vsyncadd [#allocation5], 4294967168 }
 0x257   :  { %370 = vsyncpa [#allocation4], 1 }
 0x258   :  { %371 = vsyncpa [#allocation7], 1 }
 0x259   :  { %372 = vsyncpa [#allocation5], 1 }

</bundles_post_ra>
